<compile_context>
chip_gen: v7x
topology: tpu7x:2x2x1
jax: 0.10.0
libtpu: 0.0.40
codegen_flags: <defaults>
</compile_context>

<pallas_src>
import functools

import jax
import jax.numpy as jnp
from jax.experimental import pallas as pl
from jax.experimental.pallas import tpu as pltpu

NUM_QUBITS = 8
NI = 80                               # Ni chosen so 2**(Ni/20) is an integer
HIDDEN = int(pow(2, NI / 20))         # = 16
NO = 4
OUT_PAD = 8                           # pad output rows 4 -> 8 (full sublane tile)
MAX_BLOCK_B = 4096                    # max batch lanes per grid step (sweepable)

# Packed parameter vector layout (sublane offsets, all 8-aligned).
OFF_B1 = 0
OFF_B2 = OFF_B1 + HIDDEN              # 16
OFF_THETA = OFF_B2 + NUM_QUBITS       # 24
OFF_W5 = OFF_THETA + NUM_QUBITS       # 32
OFF_B5 = OFF_W5 + OUT_PAD             # 40
PARAM_ROWS = OFF_B5 + OUT_PAD         # 48


def fc_nn_kernel(x_ref, w1T_ref, w2T_ref, p_ref, o_ref):
    # x tile arrives in its natural (block_b, NI) layout; all activations keep
    # batch on the lane axis: (features, block_b).

    # fc1 + ReLU: contract the shared NI axis on the MXU, f32 accumulate.
    #   (HIDDEN, NI) . (block_b, NI)^T -> (HIDDEN, block_b)
    h1 = jax.lax.dot_general(
        w1T_ref[...], x_ref[...],
        dimension_numbers=(((1,), (1,)), ((), ())),
        preferred_element_type=jnp.float32)
    h1 = jnp.maximum(h1 + p_ref[OFF_B1:OFF_B1 + HIDDEN, :], 0.0)      # (16, Bt)

    # fc2 + ReLU: (8, 16) @ (16, Bt).
    h2 = jnp.dot(w2T_ref[...], h1, preferred_element_type=jnp.float32)
    h2 = jnp.maximum(h2 + p_ref[OFF_B2:OFF_B2 + NUM_QUBITS, :], 0.0)  # (8, Bt)

    # TODO(synk): EstimatorQNN surrogate: <Z..Z> ~= prod_j cos(h2_j + theta_j).
    # Log-tree product over the 8 sublanes via XLU rolls (3 multiplies); after
    # the tree every row holds the full 8-term product.
    c = jnp.cos(h2 + p_ref[OFF_THETA:OFF_THETA + NUM_QUBITS, :])      # (8, Bt)
    c = c * pltpu.roll(c, shift=4, axis=0)
    c = c * pltpu.roll(c, shift=2, axis=0)
    c = c * pltpu.roll(c, shift=1, axis=0)                            # (8, Bt)

    # fc5 (Linear(1, No)) is an outer product with K=1 -> broadcast multiply.
    # Rows NO..7 of w5/b5 are zero padding, so those output rows are zero.
    w5 = p_ref[OFF_W5:OFF_W5 + OUT_PAD, :]                            # (8, 1)
    b5 = p_ref[OFF_B5:OFF_B5 + OUT_PAD, :]                            # (8, 1)
    o_ref[...] = jnp.maximum(w5 * c + b5, 0.0)


def _pick_block_b(batch):
    """Large tiles to amortize per-step overhead, but >= 2 steps when possible
    (v7x has 2 TensorCores).  Always a multiple of 128 lanes."""
    lanes = max(128, ((batch + 127) // 128) * 128)
    if lanes <= 128:
        return 128
    half = max(128, (lanes // 2 // 128) * 128)
    return int(min(MAX_BLOCK_B, half))


@functools.partial(jax.jit, static_argnames=("block_b",))
def fc_nn_forward(x, params, *, block_b=None):
    """x: (B, NI) float32.  Returns (B, NO) float32."""
    w1, b1, w2, b2, theta, w5, b5 = params
    B = x.shape[0]
    assert x.shape[1] == NI

    if block_b is None:
        block_b = _pick_block_b(B)
    bp = pl.cdiv(B, block_b) * block_b

    # Pad the batch only if it is not already a tile multiple (no copy otherwise).
    x = x.astype(jnp.float32)
    if bp != B:
        x = jnp.concatenate([x, jnp.zeros((bp - B, NI), jnp.float32)], axis=0)

    # One-time host-side parameter prep (tiny arrays, no x copies).
    w1T = jnp.asarray(w1, jnp.float32).T                              # (16, 80)
    w2T = jnp.asarray(w2, jnp.float32).T                              # (8, 16)
    pvec = jnp.zeros((PARAM_ROWS, 1), jnp.float32)
    pvec = pvec.at[OFF_B1:OFF_B1 + HIDDEN, 0].set(b1)
    pvec = pvec.at[OFF_B2:OFF_B2 + NUM_QUBITS, 0].set(b2)
    pvec = pvec.at[OFF_THETA:OFF_THETA + NUM_QUBITS, 0].set(theta)
    pvec = pvec.at[OFF_W5:OFF_W5 + NO, 0].set(w5[0])                  # rows 4..7 stay 0
    pvec = pvec.at[OFF_B5:OFF_B5 + NO, 0].set(b5)                     # rows 4..7 stay 0

    grid = (bp // block_b,)
    const = lambda i: (0, 0)          # weights stay VMEM-resident across steps

    out_padded = pl.pallas_call(
        fc_nn_kernel,
        out_shape=jax.ShapeDtypeStruct((OUT_PAD, bp), jnp.float32),
        grid=grid,
        in_specs=[
            pl.BlockSpec((block_b, NI), lambda i: (i, 0)),            # x (natural layout)
            pl.BlockSpec((HIDDEN, NI), const),                        # W1^T
            pl.BlockSpec((NUM_QUBITS, HIDDEN), const),                # W2^T
            pl.BlockSpec((PARAM_ROWS, 1), const),                     # packed b1/b2/theta/w5/b5
        ],
        out_specs=pl.BlockSpec((OUT_PAD, block_b), lambda i: (0, i)),
        compiler_params=pltpu.CompilerParams(
            dimension_semantics=("parallel",)),
    )(x, w1T, w2T, pvec)

    # Wrapper-side layout plumbing back to the PyTorch (B, NO) convention.
    return out_padded[:NO, :B].T


def fc_nn_reference(x, params):
    """Pure-JAX reference with identical semantics (for correctness check)."""
    w1, b1, w2, b2, theta, w5, b5 = params
    hp = jax.lax.Precision.HIGHEST
    h1 = jnp.maximum(jnp.dot(x, w1, precision=hp) + b1, 0.0)
    h2 = jnp.maximum(jnp.dot(h1, w2, precision=hp) + b2, 0.0)
    q = jnp.prod(jnp.cos(h2 + theta), axis=-1, keepdims=True)
    return jnp.maximum(jnp.dot(q, w5, precision=hp) + b5, 0.0)


def init_params(key):
    """Deterministic PyTorch-Linear-style init: U(-1/sqrt(fan_in), 1/sqrt(fan_in))."""
    ks = jax.random.split(key, 7)

    def lin(kw, kb, fan_in, fan_out):
        bound = 1.0 / jnp.sqrt(float(fan_in))
        w = jax.random.uniform(kw, (fan_in, fan_out), jnp.float32, -bound, bound)
        b = jax.random.uniform(kb, (fan_out,), jnp.float32, -bound, bound)
        return w, b

    w1, b1 = lin(ks[0], ks[1], NI, HIDDEN)                 # fc1
    w2, b2 = lin(ks[2], ks[3], HIDDEN, NUM_QUBITS)         # fc2
    theta = jax.random.uniform(ks[4], (NUM_QUBITS,), jnp.float32, -1.0, 1.0)
    w5, b5 = lin(ks[5], ks[6], 1, NO)                      # fc5: Linear(1, No)
    return w1, b1, w2, b2, theta, w5, b5


if __name__ == "__main__":
    key = jax.random.PRNGKey(0)
    kx, kp = jax.random.split(key)

    BATCH = 512                        # -> block_b=256, 2 parallel grid steps
    x = jax.random.normal(kx, (BATCH, NI), dtype=jnp.float32)
    params = init_params(kp)

    out = jax.block_until_ready(fc_nn_forward(x, params))
    ref = fc_nn_reference(x, params)

    assert out.shape == (BATCH, NO)
    assert bool(jnp.all(out >= 0.0))                       # final ReLU
    assert bool(jnp.allclose(out, ref, atol=2e-3, rtol=2e-3))
    print("KERNEL_OK")
</pallas_src>

<mosaic_0001>
module attributes {stable_mosaic.version = 11 : i64} {
  func.func @fc_nn_kernel(%arg0: i32, %arg1: memref<256x80xf32, #tpu.memory_space<vmem>>, %arg2: memref<16x80xf32, #tpu.memory_space<vmem>>, %arg3: memref<8x16xf32, #tpu.memory_space<vmem>>, %arg4: memref<48x1xf32, #tpu.memory_space<vmem>>, %arg5: memref<8x256xf32, #tpu.memory_space<vmem>>) attributes {dimension_semantics = [#tpu.dimension_semantics<parallel>], iteration_bounds = array<i64: 2>, scalar_prefetch = 0 : i64, scratch_operands = 0 : i64, tpu.core_type = #tpu.core_type<tc>, window_params = [{transform_indices = @transform_0, window_bounds = array<i64: 256, 80>}, {pipeline_mode = #tpu.pipeline_mode<synchronous>, transform_indices = @transform_1, window_bounds = array<i64: 16, 80>}, {pipeline_mode = #tpu.pipeline_mode<synchronous>, transform_indices = @transform_2, window_bounds = array<i64: 8, 16>}, {pipeline_mode = #tpu.pipeline_mode<synchronous>, transform_indices = @transform_3, window_bounds = array<i64: 48, 1>}, {transform_indices = @transform_4, window_bounds = array<i64: 8, 256>}]} {
    %c0 = arith.constant 0 : index
    %c0_0 = arith.constant 0 : index
    %0 = vector.load %arg2[%c0, %c0_0] : memref<16x80xf32, #tpu.memory_space<vmem>>, vector<16x80xf32>
    %c0_1 = arith.constant 0 : index
    %c0_2 = arith.constant 0 : index
    %1 = vector.load %arg1[%c0_1, %c0_2] : memref<256x80xf32, #tpu.memory_space<vmem>>, vector<256x80xf32>
    %cst = arith.constant dense<0.000000e+00> : vector<16x256xf32>
    %2 = tpu.matmul %0, %1, %cst {dimension_numbers = #tpu.dot_dimension_numbers<[1], [1], [0], [0], [0, 0, 1, 0], [], []>} : vector<16x80xf32>, vector<256x80xf32>, vector<16x256xf32> -> vector<16x256xf32>
    %c0_3 = arith.constant 0 : index
    %c0_4 = arith.constant 0 : index
    %3 = vector.load %arg4[%c0_3, %c0_4] : memref<48x1xf32, #tpu.memory_space<vmem>>, vector<16x1xf32>
    %4 = vector.broadcast %3 : vector<16x1xf32> to vector<16x256xf32>
    %5 = arith.addf %2, %4 : vector<16x256xf32>
    %cst_5 = arith.constant 0.000000e+00 : f32
    %6 = vector.broadcast %cst_5 : f32 to vector<16x256xf32>
    %7 = arith.maximumf %5, %6 : vector<16x256xf32>
    %c0_6 = arith.constant 0 : index
    %c0_7 = arith.constant 0 : index
    %8 = vector.load %arg3[%c0_6, %c0_7] : memref<8x16xf32, #tpu.memory_space<vmem>>, vector<8x16xf32>
    %cst_8 = arith.constant dense<0.000000e+00> : vector<8x256xf32>
    %9 = tpu.matmul %8, %7, %cst_8 {dimension_numbers = #tpu.dot_dimension_numbers<[1], [0], [0], [1], [0, 0, 1, 1], [], []>} : vector<8x16xf32>, vector<16x256xf32>, vector<8x256xf32> -> vector<8x256xf32>
    %c16 = arith.constant 16 : index
    %c0_9 = arith.constant 0 : index
    %10 = vector.load %arg4[%c16, %c0_9] : memref<48x1xf32, #tpu.memory_space<vmem>>, vector<8x1xf32>
    %11 = vector.broadcast %10 : vector<8x1xf32> to vector<8x256xf32>
    %12 = arith.addf %9, %11 : vector<8x256xf32>
    %cst_10 = arith.constant 0.000000e+00 : f32
    %13 = vector.broadcast %cst_10 : f32 to vector<8x256xf32>
    %14 = arith.maximumf %12, %13 : vector<8x256xf32>
    %c24 = arith.constant 24 : index
    %c0_11 = arith.constant 0 : index
    %15 = vector.load %arg4[%c24, %c0_11] : memref<48x1xf32, #tpu.memory_space<vmem>>, vector<8x1xf32>
    %16 = vector.broadcast %15 : vector<8x1xf32> to vector<8x256xf32>
    %17 = arith.addf %14, %16 : vector<8x256xf32>
    %18 = math.cos %17 : vector<8x256xf32>
    %c4_i32 = arith.constant 4 : i32
    %19 = tpu.dynamic_rotate %18 by %c4_i32 dim 0 : vector<8x256xf32>, i32 -> vector<8x256xf32>
    %20 = arith.mulf %18, %19 : vector<8x256xf32>
    %c2_i32 = arith.constant 2 : i32
    %21 = tpu.dynamic_rotate %20 by %c2_i32 dim 0 : vector<8x256xf32>, i32 -> vector<8x256xf32>
    %22 = arith.mulf %20, %21 : vector<8x256xf32>
    %c1_i32 = arith.constant 1 : i32
    %23 = tpu.dynamic_rotate %22 by %c1_i32 dim 0 : vector<8x256xf32>, i32 -> vector<8x256xf32>
    %24 = arith.mulf %22, %23 : vector<8x256xf32>
    %c32 = arith.constant 32 : index
    %c0_12 = arith.constant 0 : index
    %25 = vector.load %arg4[%c32, %c0_12] : memref<48x1xf32, #tpu.memory_space<vmem>>, vector<8x1xf32>
    %c40 = arith.constant 40 : index
    %c0_13 = arith.constant 0 : index
    %26 = vector.load %arg4[%c40, %c0_13] : memref<48x1xf32, #tpu.memory_space<vmem>>, vector<8x1xf32>
    %27 = vector.broadcast %25 : vector<8x1xf32> to vector<8x256xf32>
    %28 = arith.mulf %27, %24 : vector<8x256xf32>
    %29 = vector.broadcast %26 : vector<8x1xf32> to vector<8x256xf32>
    %30 = arith.addf %28, %29 : vector<8x256xf32>
    %cst_14 = arith.constant 0.000000e+00 : f32
    %31 = vector.broadcast %cst_14 : f32 to vector<8x256xf32>
    %32 = arith.maximumf %30, %31 : vector<8x256xf32>
    %c0_15 = arith.constant 0 : index
    %c0_16 = arith.constant 0 : index
    %33 = vector.load %arg5[%c0_15, %c0_16] : memref<8x256xf32, #tpu.memory_space<vmem>>, vector<8x256xf32>
    tpu.vector_store %arg5[%c0_15, %c0_16], %32 {strides = array<i32>} : memref<8x256xf32, #tpu.memory_space<vmem>>, vector<8x256xf32>,
    return
  }
  func.func @transform_0(%arg0: i32) -> (i32, i32) {
    %c0_i32 = arith.constant 0 : i32
    %c0_i32_0 = arith.constant 0 : i32
    return %arg0, %c0_i32 : i32, i32
  }
  func.func @transform_1(%arg0: i32) -> (i32, i32) {
    %c0_i32 = arith.constant 0 : i32
    %c0_i32_0 = arith.constant 0 : i32
    %c0_i32_1 = arith.constant 0 : i32
    return %c0_i32, %c0_i32_0 : i32, i32
  }
  func.func @transform_2(%arg0: i32) -> (i32, i32) {
    %c0_i32 = arith.constant 0 : i32
    %c0_i32_0 = arith.constant 0 : i32
    %c0_i32_1 = arith.constant 0 : i32
    return %c0_i32, %c0_i32_0 : i32, i32
  }
  func.func @transform_3(%arg0: i32) -> (i32, i32) {
    %c0_i32 = arith.constant 0 : i32
    %c0_i32_0 = arith.constant 0 : i32
    %c0_i32_1 = arith.constant 0 : i32
    return %c0_i32, %c0_i32_0 : i32, i32
  }
  func.func @transform_4(%arg0: i32) -> (i32, i32) {
    %c0_i32 = arith.constant 0 : i32
    %c0_i32_0 = arith.constant 0 : i32
    return %c0_i32, %arg0 : i32, i32
  }
}

</mosaic_0001>

<bundles_post_ra>
// kernel: fc_nn_forward.1
= control target key start
LH: loop header
LB: loop body
LE: loop exit
PB: predicated region body
PF: predicated region fallthrough
CT: control target
= control target key end

     0   :  { %s1034_s15 = smov 0   ;;  %s1240_s0 = inlined_call_operand.vmem [shape: f32[512,80], index: 0, kind: input, shape index: {}]   ;;  %s1241_s1 = inlined_call_operand.vmem [shape: f32[16,80], index: 1, kind: input, shape index: {}]   ;;  %s1242_s2 = inlined_call_operand.vmem [shape: f32[8,16], index: 2, kind: input, shape index: {}]   ;;  %s1243_s3 = inlined_call_operand.vmem [shape: f32[48,1], index: 3, kind: input, shape index: {}]   ;;  %s1244_s4 = inlined_call_operand.vmem [shape: f32[8,512], index: 4, kind: output, shape index: {}]  }
   0x1 LB: > { %s817_s16 = sadd.s32 4294967295, %s999_s15   ;;  %p821_p0 = scmp.ge.s32.totalorder %s999_s15, 1  ;;  %s999_s15 = sphi %s1034_s15, %s14_s15  }
   0x2   : > { %p163_p1 = scmp.lt.s32.totalorder %s999_s15, 3 }
   0x4   : > { %p164_p2 = pnand %p821_p0, %p163_p1 }
   0x5   : > { %s822_s17 = sshll.u32 (!%p164_p2), %s817_s16, 5  ;;  %vm247_vm0 = vcmask (!%p164_p2), 654336   ;;  %v1047_v0 = vld [vmem:[%s1241_s1] sm:$0xff] (!%p164_p2)  ;;  %v1001_v2 = vmov (!%p164_p2), 0   ;;  %v236_v3 = vld [vmem:[%s1243_s3 + $0x8] sm:$0xff] (!%p164_p2)  ;;  %v1002_v55 = vmov (!%p164_p2), 0.0  }
   0x6   : > { %167 = sbr.rel (%p164_p2) target bundleno = 636 (0x27c), region = 36  ;;  %v235_v1 = vld [vmem:[%s1243_s3] sm:$0xff] (!%p164_p2)  ;;  %p190_p3 = scmp.lt.s32.totalorder (!%p164_p2), %s822_s17, 63  ;;  %903 = vmatprep.mubr.msk.f32.mxu0 (!%p164_p2), %vm247_vm0, %v1047_v0  ;;  %983 = vset.pattern.permute.xlu0 (!%p164_p2), %v1001_v2  ;;  %vm1064_vm1 = vmpackc.low (!%p164_p2), %vm247_vm0, %vm247_vm0  ;;  %v202_v54 = vld [vmem:[%s1241_s1 + $0x8] sm:$0xff] (!%p164_p2)  ;;  %vm438_vm2 = vcmask (!%p164_p2), 130048  }
   0x7   : > { %239 = vperm.xlu0 (!%p164_p2), %983, %v235_v1   ;;  %984 = vset.pattern.permute.xlu1 (!%p164_p2), %v1001_v2  ;;  %v741_v5 = vld [vmem:[%s1243_s3 + $0x20] sm:$0xff] (!%p164_p2)  ;;  %v432_v56 = vld [vmem:[%s1243_s3 + $0x10] sm:$0xff] (!%p164_p2)  ;;  %v515_v57 = vld [vmem:[%s1243_s3 + $0x18] sm:$0xff] (!%p164_p2)  ;;  %s824_s14 = sshll.u32 (!%p164_p2), %s817_s16, 1 }
   0x8   : > { %506 = vmatprep.mubr.f32.mxu1 (!%p164_p2), %v1002_v55  ;;  %435 = vperm.xlu1 (!%p164_p2), %984, %v432_v56   ;;  %v742_v58 = vld [vmem:[%s1243_s3 + $0x28] sm:$0xff] (!%p164_p2)  ;;  %p196_p4 = scmp.lt.s32.totalorder (!%p164_p2), %s824_s14, 3 }
   0xb   : > { %244 = vperm.xlu0 (!%p164_p2), %983, %v236_v3  }
   0xc   : > { %518 = vperm.xlu1 (!%p164_p2), %984, %v515_v57  }
   0xd   : > { %s1252_s17 = smov (!%p190_p3, %s822_s17), 63  ;;  %s1254_s14 = smov (!%p196_p4, %s824_s14), 3 }
   0xe   : > { %s823_s24 = sshll.u32 %s1252_s17, 3  ;;  %s825_s16 = sshll.u32 %s1254_s14, 3 }
   0xf   : > { %s1060_s27 = scalar_lea.vmem %s1240_s0, %s823_s24  ;;  %745 = vperm.xlu0 %983, %v741_v5   ;;  %s199_s19 = scalar_lea.vmem %s1244_s4, %s825_s16 }
  0x10   : > { %v219_v6 = vld [vmem:[%s1060_s27 + $0x80] sm:$0xff]  ;;  %v220_v7 = vld [vmem:[%s1060_s27 + $0x88] sm:$0xff]  ;;  %v221_v11 = vld [vmem:[%s1060_s27 + $0x90] sm:$0xff]  ;;  %752 = vperm.xlu1 %984, %v742_v58  }
  0x11   : > { %v203_v8 = vld [vmem:[%s1060_s27] sm:$0xff]  ;;  %v907_v9 = vpack.c.bf16 %v220_v7, %v219_v6  ;;  %v204_v10 = vld [vmem:[%s1060_s27 + $0x8] sm:$0xff]  ;;  %v222_v12 = vld [vmem:[%s1060_s27 + $0x98] sm:$0xff] }
  0x12   : > { %v910_v13 = vpack.c.bf16 %v204_v10, %v203_v8  ;;  %v913_v14 = vpack.c.bf16 %v222_v12, %v221_v11  ;;  %v205_v15 = vld [vmem:[%s1060_s27 + $0x10] sm:$0xff]  ;;  %v206_v16 = vld [vmem:[%s1060_s27 + $0x18] sm:$0xff]  ;;  %v223_v17 = vld [vmem:[%s1060_s27 + $0xa0] sm:$0xff] }
  0x13   : > { %909 = vmatprep.subr.msk.bf16.mxu0 %vm1064_vm1, %v907_v9  ;;  %v224_v18 = vld [vmem:[%s1060_s27 + $0xa8] sm:$0xff]  ;;  %v916_v19 = vpack.c.bf16 %v206_v16, %v205_v15  ;;  %v207_v21 = vld [vmem:[%s1060_s27 + $0x20] sm:$0xff]  ;;  %v225_v23 = vld [vmem:[%s1060_s27 + $0xb0] sm:$0xff] }
  0x14   : > { %912 = vmatpush3.bf16.xpose.msk.msra.mxu0 %vm1064_vm1, %v910_v13  ;;  %v919_v20 = vpack.c.bf16 %v224_v18, %v223_v17  ;;  %v208_v22 = vld [vmem:[%s1060_s27 + $0x28] sm:$0xff]  ;;  %v226_v24 = vld [vmem:[%s1060_s27 + $0xb8] sm:$0xff]  ;;  %v209_v27 = vld [vmem:[%s1060_s27 + $0x30] sm:$0xff] }
  0x15   : > { %915 = vmatprep.subr.msk.bf16.mxu0 %vm1064_vm1, %v913_v14  ;;  %v922_v25 = vpack.c.bf16 %v208_v22, %v207_v21  ;;  %v925_v26 = vpack.c.bf16 %v226_v24, %v225_v23  ;;  %v210_v28 = vld [vmem:[%s1060_s27 + $0x38] sm:$0xff]  ;;  %v227_v29 = vld [vmem:[%s1060_s27 + $0xc0] sm:$0xff]  ;;  %v228_v30 = vld [vmem:[%s1060_s27 + $0xc8] sm:$0xff] }
  0x16   : > { %v928_v31 = vpack.c.bf16 %v210_v28, %v209_v27  ;;  %v931_v32 = vpack.c.bf16 %v228_v30, %v227_v29  ;;  %v211_v33 = vld [vmem:[%s1060_s27 + $0x40] sm:$0xff]  ;;  %v212_v34 = vld [vmem:[%s1060_s27 + $0x48] sm:$0xff]  ;;  %v229_v35 = vld [vmem:[%s1060_s27 + $0xd0] sm:$0xff] }
  0x17   : > { %v230_v36 = vld [vmem:[%s1060_s27 + $0xd8] sm:$0xff]  ;;  %v934_v37 = vpack.c.bf16 %v212_v34, %v211_v33  ;;  %v213_v39 = vld [vmem:[%s1060_s27 + $0x50] sm:$0xff]  ;;  %v231_v41 = vld [vmem:[%s1060_s27 + $0xe0] sm:$0xff] }
  0x18   : > { %v937_v38 = vpack.c.bf16 %v230_v36, %v229_v35  ;;  %v214_v40 = vld [vmem:[%s1060_s27 + $0x58] sm:$0xff]  ;;  %v232_v42 = vld [vmem:[%s1060_s27 + $0xe8] sm:$0xff]  ;;  %v215_v45 = vld [vmem:[%s1060_s27 + $0x60] sm:$0xff] }
  0x19   : > { %v940_v43 = vpack.c.bf16 %v214_v40, %v213_v39  ;;  %v943_v44 = vpack.c.bf16 %v232_v42, %v231_v41  ;;  %v216_v46 = vld [vmem:[%s1060_s27 + $0x68] sm:$0xff]  ;;  %v233_v47 = vld [vmem:[%s1060_s27 + $0xf0] sm:$0xff]  ;;  %v234_v48 = vld [vmem:[%s1060_s27 + $0xf8] sm:$0xff]  ;;  %v1003_v42 = vmov 683565275  }
  0x1a   : > { %v946_v49 = vpack.c.bf16 %v216_v46, %v215_v45  ;;  %v949_v50 = vpack.c.bf16 %v234_v48, %v233_v47  ;;  %v217_v51 = vld [vmem:[%s1060_s27 + $0x70] sm:$0xff]  ;;  %v218_v52 = vld [vmem:[%s1060_s27 + $0x78] sm:$0xff]  ;;  %v431_v11 = vld [vmem:[%s1242_s2] sm:$0xff]  ;;  %v1004_v46 = vmov 2475754826  }
  0x1b   : > { %v952_v53 = vpack.c.bf16 %v218_v52, %v217_v51  ;;  %v1005_v48 = vmov 2131351028   ;;  %v1007_v52 = vmov 920167782  }
  0x1c   : > { %918 = vmatpush3.bf16.xpose.msk.msra.mxu0 %vm1064_vm1, %v916_v19 }
  0x1d   : > { %921 = vmatprep.subr.msk.bf16.mxu0 %vm1064_vm1, %v919_v20 }
  0x24   : > { %924 = vmatpush3.bf16.xpose.msk.msra.mxu0 %vm1064_vm1, %v922_v25 }
  0x25   : > { %927 = vmatprep.subr.msk.bf16.mxu0 %vm1064_vm1, %v925_v26 }
  0x2c   : > { %930 = vmatpush3.bf16.xpose.msk.msra.mxu0 %vm1064_vm1, %v928_v31 }
  0x2d   : > { %933 = vmatprep.subr.msk.bf16.mxu0 %vm1064_vm1, %v931_v32 }
  0x34   : > { %936 = vmatpush3.bf16.xpose.msk.msra.mxu0 %vm1064_vm1, %v934_v37 }
  0x35   : > { %939 = vmatprep.subr.msk.bf16.mxu0 %vm1064_vm1, %v937_v38 }
  0x3c   : > { %942 = vmatpush3.bf16.xpose.msk.msra.mxu0 %vm1064_vm1, %v940_v43 }
  0x3d   : > { %945 = vmatprep.subr.msk.bf16.mxu0 %vm1064_vm1, %v943_v44 }
  0x44   : > { %948 = vmatpush3.bf16.xpose.msk.msra.mxu0 %vm1064_vm1, %v946_v49 }
  0x45   : > { %951 = vmatprep.subr.msk.bf16.mxu0 %vm1064_vm1, %v949_v50  ;;  %v1006_v50 = vmov 2102212464  }
  0x4c   : > { %954 = vmatpush3.bf16.xpose.msk.msra.mxu0 %vm1064_vm1, %v952_v53 }
  0x53   : > { %904 = vmatmul.mubr.msk.f32.vlgmr.msra.gmra.mrb[0].mxu0 %vm247_vm0, %v1047_v0 }
  0x54   : > { %905 = vmatprep.mubr.msk.f32.mxu0 %vm247_vm0, %v202_v54 }
  0x57   : > { %906 = vmatmul.mubr.msk.f32.gmra.mrb[2].mxu0 %vm247_vm0, %v202_v54 }
  0x86   : > { %v240_v59 = vpop.permute.xlu0 %239 }
  0x87   : > { %v436_v12 = vpop.permute.xlu1 %435 }
  0x8a   : > { %v245_v63 = vpop.permute.xlu0 %244 }
  0x8b   : > { %v519_v18 = vpop.permute.xlu1 %518 }
 0x126   : > { %v416_v60 = vpop.f32.mrb[0].mxu0 }
 0x127   : > { %v418_v61 = vpop.f32.mrb[1].mxu0  ;;  %v417_v62 = vadd.f32 %v416_v60, %v240_v59 }
 0x128   : > { %v419_v0 = vadd.f32 %v418_v61, %v240_v59  ;;  %v1008_v59 = vmov 1326507024  }
 0x129   : > { %v427_v5 = vmax.f32 %v417_v62, 0.0 }
 0x12a   : > { %v422_v1 = vpop.f32.mrb[2].mxu0  ;;  %v428_v7 = vmax.f32 %v419_v0, 0.0 }
 0x12b   : > { %v423_v2 = vadd.f32 %v422_v1, %v245_v63  ;;  %v424_v3 = vpop.f32.mrb[3].mxu0 }
 0x12c   : > { %v425_v4 = vadd.f32 %v424_v3, %v245_v63 }
 0x12d   : > { %v429_v6 = vmax.f32 %v423_v2, 0.0 }
 0x12e   : > { %v430_v8 = vmax.f32 %v425_v4, 0.0 }
 0x12f   : > { %v957_v9 = vpack.c.bf16 %v429_v6, %v427_v5 }
 0x130   : > { %v955_v10 = vpack.c.bf16 %v430_v8, %v428_v7 }
 0x132   : > { %956 = vmatprep.subr.bf16.mxu1 %v955_v10 }
 0x133   : > { %958 = vmatpush1.bf16.msra.mxu1 %v957_v9 }
 0x136   : > { %860 = vmatmul.mubr.msk.f32.vlgmr.msra.gmra.mrb[0].mxu1 %vm438_vm2, %v431_v11 }
 0x209   : > { %v508_v13 = vpop.f32.mrb[0].mxu1 }
 0x20a   : > { %v509_v14 = vadd.f32 %v508_v13, %v436_v12  ;;  %v510_v15 = vpop.f32.mrb[1].mxu1 }
 0x20b   : > { %v511_v16 = vadd.f32 %v510_v15, %v436_v12 }
 0x20c   : > { %v513_v17 = vmax.f32 %v509_v14, 0.0 }
 0x20d   : > { %v514_v19 = vmax.f32 %v511_v16, 0.0 }
 0x20e   : > { %v1154_v20 = vadd.f32 %v519_v18, %v513_v17 }
 0x20f   : > { %v1156_v21 = vadd.f32 %v519_v18, %v514_v19 }
 0x210   : > { %v523_v22 = vand.u32 2147483647, %v1154_v20  ;;  %v526_v23 = vand.u32 2139095040, %v1154_v20  ;;  %vm525_vm1 = vcmp.lt.s32.totalorder %v1154_v20, 0 }
 0x211   : > { %v629_v24 = vand.u32 2139095040, %v1156_v21  ;;  %v626_v27 = vand.u32 2147483647, %v1156_v21 }
 0x212   : > { %v527_v25 = vshrl.u32 %v526_v23, 23  ;;  %v530_v26 = vand.u32 8388607, %v523_v22  ;;  %vm1209_vm2 = vcmp.le.f32.partialorder %v523_v22, 0.7853982 }
 0x213   : > { %v630_v28 = vshrl.u32 %v629_v24, 23  ;;  %v1166_v33 = vand.u32 8388607, %v626_v27 }
 0x214   : > { %v861_v29 = vadd.s32 4294967169, %v527_v25  ;;  %v531_v32 = vor.u32 8388608, %v530_v26 }
 0x215   : > { %v865_v30 = vadd.s32 4294967169, %v630_v28  ;;  %v634_v40 = vor.u32 8388608, %v1166_v33 }
 0x216   : > { %v533_v31 = vadd.s32 1, %v861_v29  ;;  %v1168_v39 = vshll.u32 %v531_v32, 8 }
 0x217   : > { %v636_v34 = vadd.s32 1, %v865_v30 }
 0x218   : > { %vm534_vm3 = vcmp.gt.s32.totalorder %v533_v31, 0 }
 0x219   : > { %v535_v35 = vsel %vm534_vm3, %v533_v31, 0  ;;  %vm637_vm4 = vcmp.gt.s32.totalorder %v636_v34, 0  ;;  %vm628_vm3 = vcmp.lt.s32.totalorder %v1156_v21, 0 }
 0x21a   : > { %v536_v36 = vshrl.u32 %v535_v35, 5  ;;  %v537_v37 = vand.u32 31, %v535_v35  ;;  %v638_v38 = vsel %vm637_vm4, %v636_v34, 0  ;;  %v674_v34 = vshll.u32 %v634_v40, 8 }
 0x21b   : > { %v1171_v44 = vshrl.u32 %v638_v38, 5  ;;  %v640_v45 = vand.u32 31, %v638_v38  ;;  %vm1221_vm4 = vcmp.le.f32.partialorder %v626_v27, 0.7853982 }
 0x21c   : > { %v538_v41 = vsub.s32 32, %v537_v37  ;;  %v540_v43 = vshll.u32 %v1003_v42, %v537_v37  ;;  %v543_v47 = vshll.u32 %v1004_v46, %v537_v37  ;;  %v546_v49 = vshll.u32 %v1005_v48, %v537_v37 }
 0x21d   : > { %v549_v51 = vshll.u32 %v1006_v50, %v537_v37  ;;  %v552_v53 = vshll.u32 %v1007_v52, %v537_v37  ;;  %vm555_vm5 = vcmp.lt.s32.totalorder %v536_v36, 1  ;;  %vm556_vm6 = vcmp.lt.s32.totalorder %v536_v36, 2 }
 0x21e   : > { %v541_v54 = vshrl.u32 %v1004_v46, %v538_v41  ;;  %v544_v55 = vshrl.u32 %v1005_v48, %v538_v41  ;;  %v547_v56 = vshrl.u32 %v1006_v50, %v538_v41  ;;  %v539_v57 = vshrl.u32 %v1003_v42, %v538_v41 }
 0x21f   : > { %v550_v58 = vshrl.u32 %v1007_v52, %v538_v41  ;;  %v553_v60 = vshrl.u32 %v1008_v59, %v538_v41  ;;  %v641_v0 = vsub.s32 32, %v640_v45  ;;  %vm557_vm7 = vcmp.lt.s32.totalorder %v536_v36, 3 }
 0x220   : > { %v542_v61 = vor.u32 %v541_v54, %v540_v43  ;;  %v545_v62 = vor.u32 %v544_v55, %v543_v47  ;;  %v548_v63 = vor.u32 %v547_v56, %v546_v49  ;;  %vm558_vm8 = vcmp.lt.s32.totalorder %v536_v36, 4 }
 0x221   : > { %v551_v1 = vor.u32 %v550_v58, %v549_v51  ;;  %v554_v2 = vor.u32 %v553_v60, %v552_v53  ;;  %v643_v10 = vshll.u32 %v1003_v42, %v640_v45  ;;  %v644_v13 = vshrl.u32 %v1004_v46, %v641_v0 }
 0x222   : > { %v559_v3 = vsel %vm555_vm5, %v539_v57, %v542_v61  ;;  %v560_v4 = vsel %vm558_vm8, %v548_v63, 2102212464  ;;  %v563_v5 = vsel %vm555_vm5, %v542_v61, %v545_v62  ;;  %v567_v6 = vsel %vm555_vm5, %v545_v62, %v548_v63 }
 0x223   : > { %v561_v7 = vsel %vm557_vm7, %v545_v62, %v560_v4  ;;  %v564_v8 = vsel %vm558_vm8, %v551_v1, 920167782  ;;  %v568_v9 = vsel %vm558_vm8, %v554_v2, 1326507024  ;;  %v646_v14 = vshll.u32 %v1004_v46, %v640_v45 }
 0x224   : > { %v565_v11 = vsel %vm557_vm7, %v548_v63, %v564_v8  ;;  %v569_v12 = vsel %vm557_vm7, %v551_v1, %v568_v9  ;;  %v562_v15 = vsel %vm556_vm6, %v559_v3, %v561_v7  ;;  %v647_v18 = vshrl.u32 %v1005_v48, %v641_v0 }
 0x225   : > { %v566_v16 = vsel %vm556_vm6, %v563_v5, %v565_v11  ;;  %v570_v17 = vsel %vm556_vm6, %v567_v6, %v569_v12  ;;  %v645_v26 = vor.u32 %v644_v13, %v643_v10  ;;  %v649_v29 = vshll.u32 %v1005_v48, %v640_v45 }
 0x226   : > { %v1180_v19 = vmul.u32.u64.low %v1168_v39, %v570_v17  ;;  %v1181_v23 = vmul.u32.u64.high %v1168_v39, %v570_v17, %v1180_v19  ;;  %v1184_v24 = vmul.u32.u64.low %v1168_v39, %v566_v16  ;;  %v1185_v25 = vmul.u32.u64.high %v1168_v39, %v566_v16, %v1184_v24 }
 0x227   : > { %v648_v28 = vor.u32 %v647_v18, %v646_v14  ;;  %v650_v30 = vshrl.u32 %v1006_v50, %v641_v0  ;;  %v652_v31 = vshll.u32 %v1006_v50, %v640_v45  ;;  %v653_v32 = vshrl.u32 %v1007_v52, %v641_v0 }
 0x228   : > { %v656_v33 = vshrl.u32 %v1008_v59, %v641_v0  ;;  %v578_v35 = vmul.u32 %v1168_v39, %v562_v15  ;;  %v642_v36 = vshrl.u32 %v1003_v42, %v641_v0  ;;  %v655_v38 = vshll.u32 %v1007_v52, %v640_v45 }
 0x229   : > { %v651_v37 = vor.u32 %v650_v30, %v649_v29  ;;  %vm580_vm9 = vc.u32 %v1181_v23, %v1184_v24  ;;  %v581_v41 = vadd.s32 1, %v1185_v25  ;;  %v654_v43 = vor.u32 %v653_v32, %v652_v31 }
 0x22a   : > { %vm658_vm10 = vcmp.lt.s32.totalorder %v1171_v44, 1  ;;  %v657_v46 = vor.u32 %v656_v33, %v655_v38  ;;  %vm660_vm11 = vcmp.lt.s32.totalorder %v1171_v44, 3  ;;  %vm661_vm12 = vcmp.lt.s32.totalorder %v1171_v44, 4 }
 0x22b   : > { %v666_v47 = vsel %vm658_vm10, %v645_v26, %v648_v28  ;;  %v582_v40 = vsel %vm580_vm9, %v581_v41, %v1185_v25  ;;  %v663_v48 = vsel %vm661_vm12, %v651_v37, 2102212464  ;;  %v667_v39 = vsel %vm661_vm12, %v654_v43, 920167782 }
 0x22c   : > { %v670_v42 = vsel %vm658_vm10, %v648_v28, %v651_v37  ;;  %v583_v49 = vadd.s32 %v582_v40, %v578_v35  ;;  %vm659_vm13 = vcmp.lt.s32.totalorder %v1171_v44, 2  ;;  %v668_v45 = vsel %vm660_vm11, %v651_v37, %v667_v39 }
 0x22d   : > { %v671_v50 = vsel %vm661_vm12, %v657_v46, 1326507024  ;;  %v662_v51 = vsel %vm658_vm10, %v642_v36, %v645_v26  ;;  %v664_v52 = vsel %vm660_vm11, %v648_v28, %v663_v48  ;;  %v669_v53 = vsel %vm659_vm13, %v666_v47, %v668_v45 }
 0x22e   : > { %v672_v54 = vsel %vm660_vm11, %v654_v43, %v671_v50  ;;  %v584_v55 = vadd.s32 536870912, %v583_v49  ;;  %v1195_v57 = vmul.u32.u64.low %v674_v34, %v669_v53  ;;  %v1196_v58 = vmul.u32.u64.high %v674_v34, %v669_v53, %v1195_v57 }
 0x22f   : > { %v673_v56 = vsel %vm659_vm13, %v670_v42, %v672_v54  ;;  %v665_v62 = vsel %vm659_vm13, %v662_v51, %v664_v52  ;;  %v579_v14 = vadd.s32 %v1184_v24, %v1181_v23  ;;  %vm615_vm8 = vweird.f32 %v1154_v20 }
 0x230   : > { %v1198_v59 = vmul.u32.u64.low %v674_v34, %v673_v56  ;;  %v1199_v60 = vmul.u32.u64.high %v674_v34, %v673_v56, %v1198_v59  ;;  %v585_v61 = vshrl.u32 %v584_v55, 30  ;;  %v684_v0 = vadd.s32 1, %v1196_v58 }
 0x231   : > { %v681_v44 = vmul.u32 %v674_v34, %v665_v62  ;;  %vm718_vm12 = vweird.f32 %v1156_v21 }
 0x232   : > { %v586_v63 = vshll.u32 %v585_v61, 30  ;;  %vm683_vm14 = vc.u32 %v1199_v60, %v1195_v57  ;;  %v682_v35 = vadd.s32 %v1195_v57, %v1199_v60  ;;  %v609_v39 = vsub.s32 4, %v585_v61 }
 0x233   : > { %v685_v2 = vsel %vm683_vm14, %v684_v0, %v1196_v58 }
 0x234   : > { %v587_v1 = vsub.s32 %v583_v49, %v586_v63  ;;  %v686_v3 = vadd.s32 %v685_v2, %v681_v44  ;;  %v610_v51 = vsel %vm525_vm1, %v609_v39, %v585_v61 }
 0x235   : > { %v612_v53 = vsel %vm1209_vm2, 0, %v610_v51 }
 0x236   : > { %v589_v4 = vsub.s32 0, %v587_v1  ;;  %v687_v5 = vadd.s32 536870912, %v686_v3  ;;  %v616_v57 = vand.u32 3, %v612_v53 }
 0x238   : > { %v862_v6 = vmin.u32 %v589_v4, %v587_v1  ;;  %v688_v7 = vshrl.u32 %v687_v5, 30  ;;  %vm621_vm5 = vcmp.eq.s32.totalorder %v616_v57, 2  ;;  %vm618_vm6 = vcmp.eq.s32.totalorder %v616_v57, 0 }
 0x239   : > { %vm617_vm7 = vcmp.lt.s32.totalorder %v616_v57, 2 }
 0x23a   : > { %v591_v8 = vclz %v862_v6  ;;  %v689_v9 = vshll.u32 %v688_v7, 30  ;;  %v712_v56 = vsub.s32 4, %v688_v7 }
 0x23c   : > { %v863_v10 = vadd.s32 4294967294, %v591_v8  ;;  %v690_v11 = vsub.s32 %v686_v3, %v689_v9  ;;  %v713_v62 = vsel %vm628_vm3, %v712_v56, %v688_v7 }
 0x23d   : > { %v715_v44 = vsel %vm1221_vm4, 0, %v713_v62 }
 0x23e   : > { %vm864_vm15 = vcmp.lt.s32.totalorder %v863_v10, 0  ;;  %v692_v13 = vsub.s32 0, %v690_v11  ;;  %v719_v4 = vand.u32 3, %v715_v44 }
 0x23f   : > { %v594_v12 = vsel %vm864_vm15, 0, %v863_v10 }
 0x240   : > { %v595_v15 = vsub.s32 32, %v594_v12  ;;  %v599_v16 = vsub.s32 4294967266, %v594_v12  ;;  %v866_v17 = vmin.u32 %v692_v13, %v690_v11  ;;  %v596_v18 = vshll.u32 %v587_v1, %v594_v12 }
 0x241   : > { %vm724_vm9 = vcmp.eq.s32.totalorder %v719_v4, 2  ;;  %vm721_vm10 = vcmp.eq.s32.totalorder %v719_v4, 0  ;;  %vm720_vm11 = vcmp.lt.s32.totalorder %v719_v4, 2 }
 0x242   : > { %v597_v19 = vshrl.u32 %v579_v14, %v595_v15  ;;  %v600_v25 = vadd.s32 127, %v599_v16  ;;  %v694_v26 = vclz %v866_v17 }
 0x244   : > { %v598_v28 = vor.u32 %v597_v19, %v596_v18  ;;  %v601_v29 = vshll.u32 %v600_v25, 23  ;;  %v867_v30 = vadd.s32 4294967294, %v694_v26  ;;  %v746_v18 = vpop.permute.xlu0 %745  ;;  %v753_v26 = vpop.permute.xlu1 %752 }
 0x246   : > { %v602_v31 = vor.u32 4788187, %v601_v29  ;;  %vm868_vm0 = vcmp.lt.s32.totalorder %v867_v30, 0  ;;  %v605_v33 = vcvt.s32.f32 %v598_v28 }
 0x247   : > { %v697_v34 = vsel %vm868_vm0, 0, %v867_v30 }
 0x248   : > { %v603_v32 = vand.u32 2147483647, %v602_v31  ;;  %v698_v36 = vsub.s32 32, %v697_v34  ;;  %v702_v37 = vsub.s32 4294967266, %v697_v34  ;;  %v699_v24 = vshll.u32 %v690_v11, %v697_v34 }
 0x24a   : > { %v606_v23 = vmul.f32 %v605_v33, %v603_v32  ;;  %v700_v38 = vshrl.u32 %v682_v35, %v698_v36  ;;  %v703_v41 = vadd.s32 127, %v702_v37 }
 0x24c   : > { %v607_v43 = vxor.u32 2147483648, %v606_v23  ;;  %v701_v46 = vor.u32 %v700_v38, %v699_v24  ;;  %v704_v47 = vshll.u32 %v703_v41, 23 }
 0x24e   : > { %v608_v48 = vsel %vm525_vm1, %v607_v43, %v606_v23  ;;  %v705_v49 = vor.u32 4788187, %v704_v47  ;;  %v708_v50 = vcvt.s32.f32 %v701_v46 }
 0x24f   : > { %v611_v42 = vsel %vm1209_vm2, %v1154_v20, %v608_v48 }
 0x250   : > { %985 = vcosq.f32 %v611_v42  ;;  %v706_v45 = vand.u32 2147483647, %v705_v49 }
 0x251   : > { %987 = vsinq.f32 %v611_v42 }
 0x252   : > { %v709_v52 = vmul.f32 %v708_v50, %v706_v45 }
 0x254   : > { %v710_v22 = vxor.u32 2147483648, %v709_v52 }
 0x256   : > { %v711_v55 = vsel %vm628_vm3, %v710_v22, %v709_v52 }
 0x257   : > { %v714_v58 = vsel %vm1221_vm4, %v1156_v21, %v711_v55 }
 0x258   : > { %989 = vcosq.f32 %v714_v58 }
 0x259   : > { %991 = vsinq.f32 %v714_v58 }
 0x25a   : > { %v986_v59 = vpop.eup %985 }
 0x25b   : > { %v988_v60 = vpop.eup %987  ;;  %v622_v61 = vxor.u32 2147483648, %v986_v59 }
 0x25c   : > { %v619_v63 = vxor.u32 2147483648, %v988_v60 }
 0x25d   : > { %v623_v27 = vsel %vm621_vm5, %v622_v61, %v988_v60 }
 0x25e   : > { %v620_v0 = vsel %vm618_vm6, %v986_v59, %v619_v63 }
 0x25f   : > { %v624_v1 = vsel %vm617_vm7, %v620_v0, %v623_v27 }
 0x260   : > { %v625_v2 = vsel %vm615_vm8, nan, %v624_v1 }
 0x261   : > { %v729_v3 = vrot.slane %v625_v2, 4 }
 0x262   : > { %v990_v5 = vpop.eup %989 }
 0x263   : > { %v731_v6 = vmul.f32 %v729_v3, %v625_v2  ;;  %v992_v7 = vpop.eup %991  ;;  %v725_v8 = vxor.u32 2147483648, %v990_v5 }
 0x264   : > { %v722_v10 = vxor.u32 2147483648, %v992_v7 }
 0x265   : > { %v733_v9 = vrot.slane %v731_v6, 6  ;;  %v726_v11 = vsel %vm724_vm9, %v725_v8, %v992_v7 }
 0x266   : > { %v723_v13 = vsel %vm721_vm10, %v990_v5, %v722_v10 }
 0x267   : > { %v735_v12 = vmul.f32 %v733_v9, %v731_v6  ;;  %v727_v20 = vsel %vm720_vm11, %v723_v13, %v726_v11 }
 0x268   : > { %v728_v15 = vsel %vm718_vm12, nan, %v727_v20 }
 0x269   : > { %v737_v14 = vrot.slane %v735_v12, 7  ;;  %v730_v16 = vrot.slane %v728_v15, 4 }
 0x26b   : > { %v739_v17 = vmul.f32 %v737_v14, %v735_v12  ;;  %v732_v19 = vmul.f32 %v730_v16, %v728_v15 }
 0x26d   : > { %v748_v25 = vmul.f32 %v746_v18, %v739_v17  ;;  %v734_v28 = vrot.slane %v732_v19, 6 }
 0x26f   : > { %v755_v29 = vadd.f32 %v753_v26, %v748_v25  ;;  %v736_v30 = vmul.f32 %v734_v28, %v732_v19 }
 0x271   : > { %v757_v31 = vmax.f32 %v755_v29, 0.0  ;;  %v738_v21 = vrot.slane %v736_v30, 7 }
 0x273   : > { %759 = vst [vmem:[%s199_s19] sm:$0xff] %v757_v31  ;;  %v740_v32 = vmul.f32 %v738_v21, %v736_v30 }
 0x275   : > { %v749_v33 = vmul.f32 %v746_v18, %v740_v32 }
 0x277   : > { %v756_v34 = vadd.f32 %v753_v26, %v749_v33 }
 0x279   : > { %v758_v35 = vmax.f32 %v756_v34, 0.0 }
 0x27b   : > { %760 = vst [vmem:[%s199_s19 + $0x8] sm:$0xff] %v758_v35 }
 0x27c PF: > { %s14_s15 = sadd.s32 1, %s999_s15  }
 0x27d   : > { %p11_p5 = scmp.ge.s32.totalorder %s14_s15, 4  }
 0x27f   :  { %13 = sbr.rel (!%p11_p5) target bundleno = 1 (0x1), region = 66 }

</bundles_post_ra>
